<compile_context>
chip_gen: v7x
topology: tpu7x:2x2x1
jax: 0.10.0
libtpu: 0.0.40
codegen_flags: <defaults>
</compile_context>

<pallas_src>
import jax
import jax.numpy as jnp
from jax.experimental import pallas as pl
from jax.experimental.pallas import tpu as pltpu


def _round_up(n, m):
    return ((n + m - 1) // m) * m


def _mlp_fused_kernel(x_ref, w1_ref, b1_ref, w2_ref, b2_ref, wh_ref, bh_ref,
                      out_ref):
    # All three matmuls + ReLUs fused in one VMEM-resident kernel.
    # Accumulation / bias / ReLU are f32 regardless of the input dtype.
    x = x_ref[...]

    h1 = jnp.dot(x, w1_ref[...], preferred_element_type=jnp.float32)
    h1 = jnp.maximum(h1 + b1_ref[...], 0.0)

    h2 = jnp.dot(h1.astype(w2_ref.dtype), w2_ref[...],
                 preferred_element_type=jnp.float32)
    h2 = jnp.maximum(h2 + b2_ref[...], 0.0)

    # Fused heads: lane-dense (block_b, 128) output, single MXU pass.
    out = jnp.dot(h2.astype(wh_ref.dtype), wh_ref[...],
                  preferred_element_type=jnp.float32) + bh_ref[...]
    out_ref[...] = out.astype(out_ref.dtype)


def nn_regsif_bert_forward(x, params, *, block_b=None, use_bf16=False):
    """Fused forward pass.

    x: (B, input_size) float32.
    Returns (regression (B,1) f32, classification (B,num_classes) f32).
    """
    B, F = x.shape
    w1, b1, w2, b2, wr, br, wc, bc = params
    num_classes = wc.shape[1]
    hidden = w2.shape[1]                      # 64

    # ---- pack both heads into one lane-dense (hidden, 128) matmul ----------
    head_cols = 1 + num_classes
    head_pad = _round_up(head_cols, 128)      # 128 for num_classes=30
    head_w = jnp.zeros((hidden, head_pad), jnp.float32)
    head_w = head_w.at[:, :1].set(wr).at[:, 1:head_cols].set(wc)
    head_b = jnp.zeros((1, head_pad), jnp.float32)
    head_b = head_b.at[:, :1].set(br).at[:, 1:head_cols].set(bc)

    # ---- batch tiling (multiple of 8 sublanes, padded batch) ---------------
    if block_b is None:
        # Sweepable; 512-2048 amortizes per-step overhead and stays well under
        # v7x's 64 MiB VMEM (x tile 2*block_b*F*4 B + out 2*block_b*128*4 B).
        block_b = min(1024, _round_up(B, 8))
    block_b = max(8, _round_up(block_b, 8))
    B_pad = _round_up(B, block_b)
    if B_pad != B:
        x = jnp.pad(x, ((0, B_pad - B), (0, 0)))

    # Optional bf16 feed for the HBM-bound x read (f32 accumulation kept).
    if use_bf16:
        x = x.astype(jnp.bfloat16)
        w1 = w1.astype(jnp.bfloat16)
        w2 = w2.astype(jnp.bfloat16)
        head_w = head_w.astype(jnp.bfloat16)

    grid = (B_pad // block_b,)

    def replicated(arr):
        # Constant index_map across the grid -> single-buffered is enough.
        return pl.BlockSpec(arr.shape, lambda i: (0, 0),
                            pipeline_mode=pl.Buffered(1))

    itemsize = jnp.dtype(x.dtype).itemsize
    weight_bytes = sum(int(a.size) * jnp.dtype(a.dtype).itemsize
                       for a in (w1, b1, w2, b2, head_w, head_b))
    cost = pl.CostEstimate(
        flops=2 * B_pad * (F * 128 + 128 * hidden + hidden * head_pad),
        transcendentals=0,
        bytes_accessed=B_pad * F * itemsize + B_pad * head_pad * 4
        + weight_bytes,
    )

    out = pl.pallas_call(
        _mlp_fused_kernel,
        out_shape=jax.ShapeDtypeStruct((B_pad, head_pad), jnp.float32),
        grid=grid,
        in_specs=[
            pl.BlockSpec((block_b, F), lambda i: (i, 0)),   # x tile (pipelined)
            replicated(w1), replicated(b1),
            replicated(w2), replicated(b2),
            replicated(head_w), replicated(head_b),
        ],
        out_specs=pl.BlockSpec((block_b, head_pad), lambda i: (i, 0)),
        compiler_params=pltpu.CompilerParams(
            dimension_semantics=("parallel",)),
        cost_estimate=cost,
    )(x, w1, b1, w2, b2, head_w, head_b)

    reg = out[:B, :1]
    cls = out[:B, 1:head_cols]
    return reg, cls


def init_params(key, input_size=384, num_classes=30):
    """Deterministic synthetic parameters (PyTorch-default-style uniform init)."""
    def linear(key, fan_in, fan_out):
        kw, kb = jax.random.split(key)
        bound = 1.0 / jnp.sqrt(fan_in)
        w = jax.random.uniform(kw, (fan_in, fan_out), jnp.float32, -bound, bound)
        b = jax.random.uniform(kb, (1, fan_out), jnp.float32, -bound, bound)
        return w, b

    k1, k2, k3, k4 = jax.random.split(key, 4)
    w1, b1 = linear(k1, input_size, 128)
    w2, b2 = linear(k2, 128, 64)
    wr, br = linear(k3, 64, 1)
    wc, bc = linear(k4, 64, num_classes)
    return (w1, b1, w2, b2, wr, br, wc, bc)


def reference_forward(x, params):
    w1, b1, w2, b2, wr, br, wc, bc = params
    h1 = jnp.maximum(x @ w1 + b1, 0.0)
    h2 = jnp.maximum(h1 @ w2 + b2, 0.0)
    return h2 @ wr + br, h2 @ wc + bc


if __name__ == "__main__":
    key = jax.random.PRNGKey(0)
    k_param, k_x = jax.random.split(key)

    input_size, num_classes, batch = 384, 30, 8
    params = init_params(k_param, input_size, num_classes)
    x = jax.random.normal(k_x, (batch, input_size), jnp.float32)

    # Small single-tile run.
    reg_out, cls_out = nn_regsif_bert_forward(x, params)
    jax.block_until_ready((reg_out, cls_out))

    reg_ref, cls_ref = reference_forward(x, params)
    assert reg_out.shape == (batch, 1)
    assert cls_out.shape == (batch, num_classes)
    assert jnp.allclose(reg_out, reg_ref, atol=1e-5, rtol=1e-5)
    assert jnp.allclose(cls_out, cls_ref, atol=1e-5, rtol=1e-5)

    # Ragged batch (B not a multiple of block_b) -> exercises padding + a
    # multi-step pipelined grid.
    batch2 = 13
    x2 = jax.random.normal(jax.random.PRNGKey(1), (batch2, input_size),
                           jnp.float32)
    reg2, cls2 = nn_regsif_bert_forward(x2, params, block_b=8)
    jax.block_until_ready((reg2, cls2))
    reg2_ref, cls2_ref = reference_forward(x2, params)
    assert reg2.shape == (batch2, 1)
    assert cls2.shape == (batch2, num_classes)
    assert jnp.allclose(reg2, reg2_ref, atol=1e-5, rtol=1e-5)
    assert jnp.allclose(cls2, cls2_ref, atol=1e-5, rtol=1e-5)

    print("KERNEL_OK")
</pallas_src>

<mosaic_0001>
module attributes {stable_mosaic.version = 11 : i64} {
  func.func @_mlp_fused_kernel(%arg0: i32, %arg1: memref<8x384xf32, #tpu.memory_space<vmem>>, %arg2: memref<384x128xf32, #tpu.memory_space<vmem>>, %arg3: memref<1x128xf32, #tpu.memory_space<vmem>>, %arg4: memref<128x64xf32, #tpu.memory_space<vmem>>, %arg5: memref<1x64xf32, #tpu.memory_space<vmem>>, %arg6: memref<64x128xf32, #tpu.memory_space<vmem>>, %arg7: memref<1x128xf32, #tpu.memory_space<vmem>>, %arg8: memref<8x128xf32, #tpu.memory_space<vmem>>) attributes {dimension_semantics = [#tpu.dimension_semantics<parallel>], iteration_bounds = array<i64: 1>, scalar_prefetch = 0 : i64, scratch_operands = 0 : i64, tpu.core_type = #tpu.core_type<tc>, window_params = [{transform_indices = @transform_0, window_bounds = array<i64: 8, 384>}, {pipeline_mode = #tpu.pipeline_mode<synchronous>, transform_indices = @transform_1, window_bounds = array<i64: 384, 128>}, {pipeline_mode = #tpu.pipeline_mode<synchronous>, transform_indices = @transform_2, window_bounds = array<i64: 1, 128>}, {pipeline_mode = #tpu.pipeline_mode<synchronous>, transform_indices = @transform_3, window_bounds = array<i64: 128, 64>}, {pipeline_mode = #tpu.pipeline_mode<synchronous>, transform_indices = @transform_4, window_bounds = array<i64: 1, 64>}, {pipeline_mode = #tpu.pipeline_mode<synchronous>, transform_indices = @transform_5, window_bounds = array<i64: 64, 128>}, {pipeline_mode = #tpu.pipeline_mode<synchronous>, transform_indices = @transform_6, window_bounds = array<i64: 1, 128>}, {transform_indices = @transform_7, window_bounds = array<i64: 8, 128>}]} {
    %c0 = arith.constant 0 : index
    %c0_0 = arith.constant 0 : index
    %0 = vector.load %arg1[%c0, %c0_0] : memref<8x384xf32, #tpu.memory_space<vmem>>, vector<8x384xf32>
    %c0_1 = arith.constant 0 : index
    %c0_2 = arith.constant 0 : index
    %1 = vector.load %arg2[%c0_1, %c0_2] : memref<384x128xf32, #tpu.memory_space<vmem>>, vector<384x128xf32>
    %cst = arith.constant dense<0.000000e+00> : vector<8x128xf32>
    %2 = tpu.matmul %0, %1, %cst {dimension_numbers = #tpu.dot_dimension_numbers<[1], [0], [0], [1], [0, 0, 1, 1], [], []>} : vector<8x384xf32>, vector<384x128xf32>, vector<8x128xf32> -> vector<8x128xf32>
    %c0_3 = arith.constant 0 : index
    %c0_4 = arith.constant 0 : index
    %3 = vector.load %arg3[%c0_3, %c0_4] : memref<1x128xf32, #tpu.memory_space<vmem>>, vector<1x128xf32>
    %4 = vector.broadcast %3 : vector<1x128xf32> to vector<8x128xf32>
    %5 = arith.addf %2, %4 : vector<8x128xf32>
    %cst_5 = arith.constant 0.000000e+00 : f32
    %6 = vector.broadcast %cst_5 : f32 to vector<8x128xf32>
    %7 = arith.maximumf %5, %6 : vector<8x128xf32>
    %c0_6 = arith.constant 0 : index
    %c0_7 = arith.constant 0 : index
    %8 = vector.load %arg4[%c0_6, %c0_7] : memref<128x64xf32, #tpu.memory_space<vmem>>, vector<128x64xf32>
    %cst_8 = arith.constant dense<0.000000e+00> : vector<8x64xf32>
    %9 = tpu.matmul %7, %8, %cst_8 {dimension_numbers = #tpu.dot_dimension_numbers<[1], [0], [0], [1], [0, 0, 1, 1], [], []>} : vector<8x128xf32>, vector<128x64xf32>, vector<8x64xf32> -> vector<8x64xf32>
    %c0_9 = arith.constant 0 : index
    %c0_10 = arith.constant 0 : index
    %10 = vector.load %arg5[%c0_9, %c0_10] : memref<1x64xf32, #tpu.memory_space<vmem>>, vector<1x64xf32>
    %11 = vector.broadcast %10 : vector<1x64xf32> to vector<8x64xf32>
    %12 = arith.addf %9, %11 : vector<8x64xf32>
    %cst_11 = arith.constant 0.000000e+00 : f32
    %13 = vector.broadcast %cst_11 : f32 to vector<8x64xf32>
    %14 = arith.maximumf %12, %13 : vector<8x64xf32>
    %c0_12 = arith.constant 0 : index
    %c0_13 = arith.constant 0 : index
    %15 = vector.load %arg6[%c0_12, %c0_13] : memref<64x128xf32, #tpu.memory_space<vmem>>, vector<64x128xf32>
    %cst_14 = arith.constant dense<0.000000e+00> : vector<8x128xf32>
    %16 = tpu.matmul %14, %15, %cst_14 {dimension_numbers = #tpu.dot_dimension_numbers<[1], [0], [0], [1], [0, 0, 1, 1], [], []>} : vector<8x64xf32>, vector<64x128xf32>, vector<8x128xf32> -> vector<8x128xf32>
    %c0_15 = arith.constant 0 : index
    %c0_16 = arith.constant 0 : index
    %17 = vector.load %arg7[%c0_15, %c0_16] : memref<1x128xf32, #tpu.memory_space<vmem>>, vector<1x128xf32>
    %18 = vector.broadcast %17 : vector<1x128xf32> to vector<8x128xf32>
    %19 = arith.addf %16, %18 : vector<8x128xf32>
    %c0_17 = arith.constant 0 : index
    %c0_18 = arith.constant 0 : index
    %20 = vector.load %arg8[%c0_17, %c0_18] : memref<8x128xf32, #tpu.memory_space<vmem>>, vector<8x128xf32>
    tpu.vector_store %arg8[%c0_17, %c0_18], %19 {strides = array<i32>} : memref<8x128xf32, #tpu.memory_space<vmem>>, vector<8x128xf32>,
    return
  }
  func.func @transform_0(%arg0: i32) -> (i32, i32) {
    %c0_i32 = arith.constant 0 : i32
    %c0_i32_0 = arith.constant 0 : i32
    return %arg0, %c0_i32 : i32, i32
  }
  func.func @transform_1(%arg0: i32) -> (i32, i32) {
    %c0_i32 = arith.constant 0 : i32
    %c0_i32_0 = arith.constant 0 : i32
    %c0_i32_1 = arith.constant 0 : i32
    return %c0_i32, %c0_i32_0 : i32, i32
  }
  func.func @transform_2(%arg0: i32) -> (i32, i32) {
    %c0_i32 = arith.constant 0 : i32
    %c0_i32_0 = arith.constant 0 : i32
    %c0_i32_1 = arith.constant 0 : i32
    return %c0_i32, %c0_i32_0 : i32, i32
  }
  func.func @transform_3(%arg0: i32) -> (i32, i32) {
    %c0_i32 = arith.constant 0 : i32
    %c0_i32_0 = arith.constant 0 : i32
    %c0_i32_1 = arith.constant 0 : i32
    return %c0_i32, %c0_i32_0 : i32, i32
  }
  func.func @transform_4(%arg0: i32) -> (i32, i32) {
    %c0_i32 = arith.constant 0 : i32
    %c0_i32_0 = arith.constant 0 : i32
    %c0_i32_1 = arith.constant 0 : i32
    return %c0_i32, %c0_i32_0 : i32, i32
  }
  func.func @transform_5(%arg0: i32) -> (i32, i32) {
    %c0_i32 = arith.constant 0 : i32
    %c0_i32_0 = arith.constant 0 : i32
    %c0_i32_1 = arith.constant 0 : i32
    return %c0_i32, %c0_i32_0 : i32, i32
  }
  func.func @transform_6(%arg0: i32) -> (i32, i32) {
    %c0_i32 = arith.constant 0 : i32
    %c0_i32_0 = arith.constant 0 : i32
    %c0_i32_1 = arith.constant 0 : i32
    return %c0_i32, %c0_i32_0 : i32, i32
  }
  func.func @transform_7(%arg0: i32) -> (i32, i32) {
    %c0_i32 = arith.constant 0 : i32
    %c0_i32_0 = arith.constant 0 : i32
    return %arg0, %c0_i32 : i32, i32
  }
}

</mosaic_0001>

<bundles_post_ra>
// kernel: tpu_custom_call.1
= control target key start
LH: loop header
LB: loop body
LE: loop exit
PB: predicated region body
PF: predicated region fallthrough
CT: control target
= control target key end

     0   :  { %12 = vsyncpa [#allocation3], 0  ;;  %s944_s0 = inlined_call_operand.vmem [shape: f32[8,384], index: 0, kind: input, shape index: {}]   ;;  %s945_s1 = inlined_call_operand.hbm [shape: f32[384,128], index: 1, kind: input, shape index: {}]   ;;  %s946_s2 = inlined_call_operand.vmem [shape: f32[1,128], index: 2, kind: input, shape index: {}]   ;;  %s947_s3 = inlined_call_operand.vmem [shape: f32[128,64], index: 3, kind: input, shape index: {}]   ;;  %s948_s4 = inlined_call_operand.vmem [shape: f32[1,64], index: 4, kind: input, shape index: {}]   ;;  %s949_s5 = inlined_call_operand.vmem [shape: f32[64,128], index: 5, kind: input, shape index: {}]   ;;  %s950_s6 = inlined_call_operand.vmem [shape: f32[1,128], index: 6, kind: input, shape index: {}]   ;;  %s951_s7 = inlined_call_operand.hbm [shape: f32[8,128], index: 7, kind: output, shape index: {}]  }
   0x1   :  { %13 = vsyncpa [#allocation4], 0  ;;  %s757_s24 = smov [#allocation2]   ;;  %s709_s28 = scalar_lea.hbm %s945_s1, 6144 }
   0x2   :  { %s21_s25 = sshll.u32 %s757_s24, 4  ;;  %p710_p0 = scmp.ne.s32.totalorder %s945_s1, %s709_s28  ;;  %s22_s25 = int_to_ptr.vmem [resolvable:$true] %s21_s25 }
   0x3   :  { %p713_p1 = scmp.lt.u32.totalorder %s709_s28, %s945_s1 }
   0x5   :  { %p715_p2 = pnand %p713_p1, %p710_p0 }
   0x7   :  { %718 = shalt.err (!%p715_p2)
}
   0x8   :  { %s719_s10 = scalar_lea.vmem %s22_s25, 6144  ;;  %p724_p4 = scmp.lt.s32.totalorder %s22_s25, %s22_s25 }
   0x9   :  { %p720_p3 = scmp.ne.s32.totalorder %s22_s25, %s719_s10  ;;  %p725_p5 = scmp.lt.s32.totalorder %s719_s10, %s719_s10 }
   0xb   :  { %p726_p6 = por %p725_p5, %p724_p4 }
   0xd   :  { %p727_p7 = pnand %p726_p6, %p720_p3 }
   0xf   :  { %730 = shalt.err (!%p727_p7)
}
  0x10   :  { %s758_s11 = smov 128   ;;  %s759_s12 = smov 8  }
  0x11   :  { %27 = dma.hbm_to_vmem [thread:$0]  %s945_s1, 6144, %s22_s25, [#allocation3], %s758_s11, %s758_s11, %s759_s12  }
  0x12   :  { %753 = dma.done.wait [#allocation3], 6144  }
  0x13   :  { %754 = vsyncadd [#allocation3], 4294961152  ;;  %v760_v0 = vmov 0.0|0.0   ;;  %vm761_vm0 = vmmov 0   ;;  %v762_v1 = vmov 0.0   ;;  %v60_v2 = vld [vmem:[#allocation2 + $0x80] sm:$0xff] }
  0x14   :  { %642 = vmatprep.subr.bf16.mxu1 %v760_v0  ;;  %553 = vmatprep.mubr.msk.f32.mxu1 %vm761_vm0, %v762_v1  ;;  %v61_v3 = vld [vmem:[#allocation2 + $0x88] sm:$0xff]  ;;  %v44_v4 = vld [vmem:[#allocation2] sm:$0xff]  ;;  %v62_v7 = vld [vmem:[#allocation2 + $0x90] sm:$0xff]  ;;  %vm349_vm1 = vcmask 523264   ;;  %s763_s22 = smov [#allocation5]  }
  0x15   :  { %v610_v5 = vpack.c.bf16 %v61_v3, %v60_v2  ;;  %v45_v6 = vld [vmem:[#allocation2 + $0x8] sm:$0xff]  ;;  %v63_v8 = vld [vmem:[#allocation2 + $0x98] sm:$0xff]  ;;  %v46_v11 = vld [vmem:[#allocation2 + $0x10] sm:$0xff]  ;;  %s430_s23 = sshll.u32 %s763_s22, 4  ;;  %s431_s23 = int_to_ptr.vmem [resolvable:$true] %s430_s23 }
  0x16   :  { %v612_v9 = vpack.c.bf16 %v45_v6, %v44_v4  ;;  %v614_v10 = vpack.c.bf16 %v63_v8, %v62_v7  ;;  %v47_v12 = vld [vmem:[#allocation2 + $0x18] sm:$0xff]  ;;  %v76_v13 = vld [vmem:[#allocation2 + $0x100] sm:$0xff]  ;;  %v77_v14 = vld [vmem:[#allocation2 + $0x108] sm:$0xff]  ;;  %p736_p9 = scmp.lt.s32.totalorder %s431_s23, %s431_s23 }
  0x17   :  { %611 = vmatprep.subr.bf16.mxu0 %v610_v5  ;;  %v64_v15 = vld [vmem:[#allocation2 + $0xa0] sm:$0xff]  ;;  %v65_v16 = vld [vmem:[#allocation2 + $0xa8] sm:$0xff]  ;;  %v616_v17 = vpack.c.bf16 %v47_v12, %v46_v11  ;;  %v643_v18 = vpack.c.bf16 %v77_v14, %v76_v13  ;;  %v78_v19 = vld [vmem:[#allocation2 + $0x110] sm:$0xff] }
  0x18   :  { %613 = vmatpush3.bf16.msra.mxu0 %v612_v9  ;;  %v618_v20 = vpack.c.bf16 %v65_v16, %v64_v15  ;;  %v48_v21 = vld [vmem:[#allocation2 + $0x20] sm:$0xff]  ;;  %v49_v22 = vld [vmem:[#allocation2 + $0x28] sm:$0xff]  ;;  %v79_v23 = vld [vmem:[#allocation2 + $0x118] sm:$0xff] }
  0x19   :  { %615 = vmatprep.subr.bf16.mxu0 %v614_v10  ;;  %644 = vmatpush3.bf16.msra.mxu1 %v643_v18  ;;  %v646_v24 = vpack.c.bf16 %v79_v23, %v78_v19  ;;  %v66_v25 = vld [vmem:[#allocation2 + $0xb0] sm:$0xff]  ;;  %v67_v26 = vld [vmem:[#allocation2 + $0xb8] sm:$0xff]  ;;  %v80_v27 = vld [vmem:[#allocation2 + $0x120] sm:$0xff]  ;;  %v620_v29 = vpack.c.bf16 %v49_v22, %v48_v21 }
  0x1a   :  { %645 = vmatprep.subr.bf16.mxu1 %v760_v0  ;;  %v81_v28 = vld [vmem:[#allocation2 + $0x128] sm:$0xff]  ;;  %v622_v30 = vpack.c.bf16 %v67_v26, %v66_v25  ;;  %v50_v31 = vld [vmem:[#allocation2 + $0x30] sm:$0xff]  ;;  %v51_v32 = vld [vmem:[#allocation2 + $0x38] sm:$0xff] }
  0x1b   :  { %v649_v33 = vpack.c.bf16 %v81_v28, %v80_v27  ;;  %v68_v34 = vld [vmem:[#allocation2 + $0xc0] sm:$0xff]  ;;  %v69_v35 = vld [vmem:[#allocation2 + $0xc8] sm:$0xff]  ;;  %v82_v36 = vld [vmem:[#allocation2 + $0x130] sm:$0xff]  ;;  %v624_v38 = vpack.c.bf16 %v51_v32, %v50_v31 }
  0x1c   :  { %617 = vmatpush3.bf16.msra.mxu0 %v616_v17  ;;  %v83_v37 = vld [vmem:[#allocation2 + $0x138] sm:$0xff]  ;;  %v626_v39 = vpack.c.bf16 %v69_v35, %v68_v34  ;;  %v52_v40 = vld [vmem:[#allocation2 + $0x40] sm:$0xff]  ;;  %v53_v41 = vld [vmem:[#allocation2 + $0x48] sm:$0xff] }
  0x1d   :  { %619 = vmatprep.subr.bf16.mxu0 %v618_v20  ;;  %647 = vmatpush3.bf16.msra.mxu1 %v646_v24  ;;  %v652_v42 = vpack.c.bf16 %v83_v37, %v82_v36  ;;  %v70_v43 = vld [vmem:[#allocation2 + $0xd0] sm:$0xff]  ;;  %v71_v44 = vld [vmem:[#allocation2 + $0xd8] sm:$0xff]  ;;  %v84_v45 = vld [vmem:[#allocation2 + $0x140] sm:$0xff]  ;;  %v628_v48 = vpack.c.bf16 %v53_v41, %v52_v40 }
  0x1e   :  { %648 = vmatprep.subr.bf16.mxu1 %v760_v0  ;;  %v85_v46 = vld [vmem:[#allocation2 + $0x148] sm:$0xff]  ;;  %v630_v49 = vpack.c.bf16 %v71_v44, %v70_v43  ;;  %v54_v50 = vld [vmem:[#allocation2 + $0x50] sm:$0xff]  ;;  %v55_v51 = vld [vmem:[#allocation2 + $0x58] sm:$0xff] }
  0x1f   :  { %v42_v47 = vld [vmem:[%s944_s0 + $0x8] sm:$0xff]  ;;  %v655_v52 = vpack.c.bf16 %v85_v46, %v84_v45  ;;  %v72_v53 = vld [vmem:[#allocation2 + $0xe0] sm:$0xff]  ;;  %v86_v55 = vld [vmem:[#allocation2 + $0x150] sm:$0xff]  ;;  %v632_v57 = vpack.c.bf16 %v55_v51, %v54_v50 }
  0x20   :  { %621 = vmatpush3.bf16.msra.mxu0 %v620_v29  ;;  %163 = vmatprep.mubr.f32.mxu0 %v42_v47  ;;  %v73_v54 = vld [vmem:[#allocation2 + $0xe8] sm:$0xff]  ;;  %v87_v56 = vld [vmem:[#allocation2 + $0x158] sm:$0xff]  ;;  %v56_v59 = vld [vmem:[#allocation2 + $0x60] sm:$0xff] }
  0x21   :  { %623 = vmatprep.subr.bf16.mxu0 %v622_v30  ;;  %650 = vmatpush3.bf16.msra.mxu1 %v649_v33  ;;  %v634_v58 = vpack.c.bf16 %v73_v54, %v72_v53  ;;  %v57_v60 = vld [vmem:[#allocation2 + $0x68] sm:$0xff]  ;;  %v658_v61 = vpack.c.bf16 %v87_v56, %v86_v55  ;;  %v74_v62 = vld [vmem:[#allocation2 + $0xf0] sm:$0xff]  ;;  %v75_v63 = vld [vmem:[#allocation2 + $0xf8] sm:$0xff] }
  0x22   :  { %651 = vmatprep.subr.bf16.mxu1 %v760_v0  ;;  %v88_v2 = vld [vmem:[#allocation2 + $0x160] sm:$0xff]  ;;  %v89_v3 = vld [vmem:[#allocation2 + $0x168] sm:$0xff]  ;;  %v636_v4 = vpack.c.bf16 %v57_v60, %v56_v59  ;;  %v638_v5 = vpack.c.bf16 %v75_v63, %v74_v62  ;;  %v58_v6 = vld [vmem:[#allocation2 + $0x70] sm:$0xff] }
  0x23   :  { %v59_v7 = vld [vmem:[#allocation2 + $0x78] sm:$0xff]  ;;  %v661_v8 = vpack.c.bf16 %v89_v3, %v88_v2  ;;  %v90_v9 = vld [vmem:[#allocation2 + $0x170] sm:$0xff]  ;;  %v240_v12 = vld [vmem:[%s947_s3] sm:$0xff] }
  0x24   :  { %625 = vmatpush3.bf16.msra.mxu0 %v624_v38  ;;  %v91_v10 = vld [vmem:[#allocation2 + $0x178] sm:$0xff]  ;;  %v640_v11 = vpack.c.bf16 %v59_v7, %v58_v6  ;;  %v241_v13 = vld [vmem:[%s947_s3 + $0x8] sm:$0xff]  ;;  %v41_v15 = vld [vmem:[%s944_s0] sm:$0xff] }
  0x25   :  { %627 = vmatprep.subr.bf16.mxu0 %v626_v39  ;;  %653 = vmatpush3.bf16.msra.mxu1 %v652_v42  ;;  %v664_v14 = vpack.c.bf16 %v91_v10, %v90_v9  ;;  %v667_v16 = vpack.c.bf16 %v241_v13, %v240_v12  ;;  %v242_v17 = vld [vmem:[%s947_s3 + $0x10] sm:$0xff]  ;;  %v243_v18 = vld [vmem:[%s947_s3 + $0x18] sm:$0xff]  ;;  %v244_v21 = vld [vmem:[%s947_s3 + $0x20] sm:$0xff] }
  0x26   :  { %654 = vmatprep.subr.bf16.mxu1 %v760_v0  ;;  %v43_v19 = vld [vmem:[%s944_s0 + $0x10] sm:$0xff]  ;;  %v670_v20 = vpack.c.bf16 %v243_v18, %v242_v17  ;;  %v245_v22 = vld [vmem:[%s947_s3 + $0x28] sm:$0xff]  ;;  %v247_v25 = vld [vmem:[%s947_s3 + $0x38] sm:$0xff] }
  0x27   :  { %v673_v23 = vpack.c.bf16 %v245_v22, %v244_v21  ;;  %v246_v24 = vld [vmem:[%s947_s3 + $0x30] sm:$0xff]  ;;  %v249_v27 = vld [vmem:[%s947_s3 + $0x48] sm:$0xff]  ;;  %v251_v30 = vld [vmem:[%s947_s3 + $0x58] sm:$0xff] }
  0x28   :  { %629 = vmatpush3.bf16.msra.mxu0 %v628_v48  ;;  %v676_v26 = vpack.c.bf16 %v247_v25, %v246_v24  ;;  %v250_v29 = vld [vmem:[%s947_s3 + $0x50] sm:$0xff]  ;;  %v252_v32 = vld [vmem:[%s947_s3 + $0x60] sm:$0xff]  ;;  %v253_v33 = vld [vmem:[%s947_s3 + $0x68] sm:$0xff] }
  0x29   :  { %631 = vmatprep.subr.bf16.mxu0 %v630_v49  ;;  %656 = vmatpush3.bf16.msra.mxu1 %v655_v52  ;;  %v682_v31 = vpack.c.bf16 %v251_v30, %v250_v29  ;;  %v685_v34 = vpack.c.bf16 %v253_v33, %v252_v32  ;;  %v254_v35 = vld [vmem:[%s947_s3 + $0x70] sm:$0xff]  ;;  %v255_v36 = vld [vmem:[%s947_s3 + $0x78] sm:$0xff]  ;;  %v334_v38 = vld [vmem:[%s949_s5] sm:$0xff] }
  0x2a   :  { %657 = vmatprep.subr.bf16.mxu1 %v760_v0  ;;  %v688_v37 = vpack.c.bf16 %v255_v36, %v254_v35  ;;  %v335_v39 = vld [vmem:[%s949_s5 + $0x8] sm:$0xff]  ;;  %v336_v40 = vld [vmem:[%s949_s5 + $0x10] sm:$0xff]  ;;  %v337_v42 = vld [vmem:[%s949_s5 + $0x18] sm:$0xff] }
  0x2b   :  { %v691_v41 = vpack.c.bf16 %v335_v39, %v334_v38  ;;  %v694_v43 = vpack.c.bf16 %v337_v42, %v336_v40  ;;  %v338_v44 = vld [vmem:[%s949_s5 + $0x20] sm:$0xff]  ;;  %v339_v45 = vld [vmem:[%s949_s5 + $0x28] sm:$0xff]  ;;  %v340_v56 = vld [vmem:[%s949_s5 + $0x30] sm:$0xff] }
  0x2c   :  { %633 = vmatpush3.bf16.msra.mxu0 %v632_v57  ;;  %v697_v46 = vpack.c.bf16 %v339_v45, %v338_v44  ;;  %v439_v49 = vld [vmem:[%s946_s2] ss:$0 sm:$0xff] }
  0x2d   :  { %635 = vmatprep.subr.bf16.mxu0 %v634_v58  ;;  %659 = vmatpush3.bf16.msra.mxu1 %v658_v61  ;;  %v440_v58 = vld [vmem:[%s948_s4] ss:$0 sm:$0xff] }
  0x2e   :  { %660 = vmatprep.subr.bf16.mxu1 %v760_v0  ;;  %v441_v63 = vld [vmem:[%s950_s6] ss:$0 sm:$0xff] }
  0x30   :  { %637 = vmatpush3.bf16.msra.mxu0 %v636_v4 }
  0x31   :  { %639 = vmatprep.subr.bf16.mxu0 %v638_v5  ;;  %662 = vmatpush3.bf16.msra.mxu1 %v661_v8 }
  0x32   :  { %663 = vmatprep.subr.bf16.mxu1 %v760_v0 }
  0x34   :  { %641 = vmatpush3.bf16.msra.mxu0 %v640_v11 }
  0x35   :  { %666 = vmatprep.subr.bf16.mxu0 %v760_v0  ;;  %665 = vmatpush3.bf16.msra.mxu1 %v664_v14 }
  0x36   :  { %690 = vmatprep.subr.bf16.mxu1 %v760_v0 }
  0x37   :  { %164 = vmatmul.mubr.f32.vlgmr.msra.gmra.mrb[0].mxu0 %v41_v15 }
  0x38   :  { %668 = vmatpush3.bf16.msra.mxu0 %v667_v16  ;;  %588 = vmatprep.mubr.msk.f32.mxu0 %vm761_vm0, %v762_v1 }
  0x39   :  { %554 = vmatmul.mubr.f32.vlgmr.msra.gmra.mrb[0].mxu1 %v43_v19  ;;  %669 = vmatprep.subr.bf16.mxu0 %v760_v0 }
  0x3a   :  { %607 = vmatprep.mubr.msk.f32.mxu1 %vm761_vm0, %v762_v1  ;;  %v248_v1 = vld [vmem:[%s947_s3 + $0x40] sm:$0xff]  ;;  %692 = vmatpush3.bf16.msra.mxu1 %v691_v41 }
  0x3b   :  { %v679_v28 = vpack.c.bf16 %v249_v27, %v248_v1  ;;  %693 = vmatprep.subr.bf16.mxu1 %v760_v0 }
  0x3c   :  { %671 = vmatpush3.bf16.msra.mxu0 %v670_v20 }
  0x3d   :  { %672 = vmatprep.subr.bf16.mxu0 %v760_v0 }
  0x3e   :  { %695 = vmatpush3.bf16.msra.mxu1 %v694_v43 }
  0x3f   :  { %696 = vmatprep.subr.bf16.mxu1 %v760_v0 }
  0x40   :  { %674 = vmatpush3.bf16.msra.mxu0 %v673_v23 }
  0x41   :  { %675 = vmatprep.subr.bf16.mxu0 %v760_v0 }
  0x42   :  { %698 = vmatpush3.bf16.msra.mxu1 %v697_v46 }
  0x43   :  { %699 = vmatprep.subr.bf16.mxu1 %v760_v0 }
  0x44   :  { %677 = vmatpush3.bf16.msra.mxu0 %v676_v26 }
  0x45   :  { %678 = vmatprep.subr.bf16.mxu0 %v760_v0 }
  0x48   :  { %680 = vmatpush3.bf16.msra.mxu0 %v679_v28 }
  0x49   :  { %681 = vmatprep.subr.bf16.mxu0 %v760_v0 }
  0x4c   :  { %683 = vmatpush3.bf16.msra.mxu0 %v682_v31 }
  0x4d   :  { %684 = vmatprep.subr.bf16.mxu0 %v760_v0 }
  0x50   :  { %686 = vmatpush3.bf16.msra.mxu0 %v685_v34 }
  0x51   :  { %687 = vmatprep.subr.bf16.mxu0 %v760_v0  ;;  %v341_v0 = vld [vmem:[%s949_s5 + $0x38] sm:$0xff]  ;;  %s731_s5 = scalar_lea.vmem %s431_s23, 128 }
  0x52   :  { %v700_v57 = vpack.c.bf16 %v341_v0, %v340_v56  ;;  %p732_p8 = scmp.ne.s32.totalorder %s431_s23, %s731_s5  ;;  %p737_p10 = scmp.lt.s32.totalorder %s731_s5, %s731_s5 }
  0x54   :  { %689 = vmatpush3.bf16.msra.mxu0 %v688_v37  ;;  %701 = vmatpush3.bf16.msra.mxu1 %v700_v57  ;;  %p738_p11 = por %p737_p10, %p736_p9 }
  0x56   :  { %p739_p12 = pnand %p738_p11, %p732_p8 }
 0x10a   :  { %v475_v47 = vpop.f32.mrb[0].mxu0 }
 0x10b   :  { %v476_v48 = vpop.f32.mrb[1].mxu0 }
 0x10c   :  { %v477_v50 = vadd.f32 %v476_v48, %v475_v47  ;;  %v235_v51 = vpop.f32.mrb[0].mxu1 }
 0x10d   :  { %v555_v52 = vpop.f32.mrb[1].mxu1 }
 0x10e   :  { %v166_v53 = vadd.f32 %v477_v50, %v439_v49 }
 0x110   :  { %v236_v54 = vadd.f32 %v235_v51, %v166_v53 }
 0x112   :  { %v239_v55 = vmax.f32 %v236_v54, 0.0 }
 0x114   :  { %589 = vmatmul.mubr.f32.vlgmr.msra.gmra.mrb[2].mxu0 %v239_v55 }
 0x1e7   :  { %v329_v59 = vpop.f32.mrb[2].mxu0 }
 0x1e8   :  { %v330_v60 = vadd.f32 %v440_v58, %v329_v59  ;;  %v590_v61 = vpop.f32.mrb[3].mxu0 }
 0x1ea   :  { %v333_v62 = vmax.f32 %v330_v60, 0.0 }
 0x1ec   :  { %608 = vmatmul.mubr.msk.f32.vlgmr.msra.gmra.mrb[2].mxu1 %vm349_vm1, %v333_v62 }
 0x2bf   :  { %v419_v2 = vpop.f32.mrb[2].mxu1 }
 0x2c0   :  { %v420_v3 = vadd.f32 %v441_v63, %v419_v2  ;;  %v609_v4 = vpop.f32.mrb[3].mxu1 }
 0x2c2   :  { %423 = vst [vmem:[#allocation5] sm:$0xff] %v420_v3 }
 0x2c3   :  { %742 = shalt.err (!%p739_p12)
}
 0x2c4   :  { %s743_s25 = scalar_lea.hbm %s951_s7, 128 }
 0x2c5   :  { %p744_p13 = scmp.ne.s32.totalorder %s951_s7, %s743_s25  ;;  %p747_p0 = scmp.lt.u32.totalorder %s743_s25, %s951_s7 }
 0x2c7   :  { %p749_p1 = pnand %p747_p0, %p744_p13 }
 0x2c9   :  { %752 = shalt.err (!%p749_p1)
}
 0x2ca   :  { %433 = dma.vmem_to_hbm [thread:$0]  %s431_s23, 128, %s951_s7, [#allocation4]  }
 0x2cb   :  { %755 = dma.done.wait [#allocation4], 128  }
 0x2cc   :  { %756 = vsyncadd [#allocation4], 4294967168 }
 0x2cd   :  { %437 = vsyncpa [#allocation3], 1 }
 0x2ce   :  { %438 = vsyncpa [#allocation4], 1 }

</bundles_post_ra>
